<compile_context>
chip_gen: v7x
topology: tpu7x:2x2x1
jax: 0.10.0
libtpu: 0.0.40
codegen_flags: <defaults>
</compile_context>

<pallas_src>
import jax
import jax.numpy as jnp
from jax.experimental import pallas as pl
from jax.experimental.pallas import tpu as pltpu

_LANE = 128
_MAX_LANE_TILE = 8192


def _affine_kernel(x_ref, w_ref, b_ref, o_ref):
    # Per-channel FMA in f32, cast only at the store.  w_ref/b_ref broadcast
    # against the x tile: (cc, 1) for the (N*C, S) layout, (1, cs) for the
    # (N, C*S) layout.
    x = x_ref[...].astype(jnp.float32)
    o_ref[...] = (x * w_ref[...] + b_ref[...]).astype(o_ref.dtype)


def _round_up(x, m):
    return ((x + m - 1) // m) * m


def _sublane_align(dtype):
    itemsize = jnp.dtype(dtype).itemsize
    if itemsize >= 4:
        return 8
    if itemsize == 2:
        return 16
    return 32


def _vmem_capacity_bytes():
    try:
        info = pltpu.get_tpu_info()
        cap = getattr(info, "vmem_capacity_bytes", None)
        if cap:
            return int(cap)
    except Exception:
        pass
    return 128 << 20  # conservative default (v5e/v6e class)


def _choose_lane_tile(L):
    """Near-equal lane blocks: multiples of 128, capped at ~8192."""
    if L <= _MAX_LANE_TILE:
        return L  # full extent is always a legal block shape
    n_blocks = pl.cdiv(L, _MAX_LANE_TILE)
    return _round_up(pl.cdiv(L, n_blocks), _LANE)


def _choose_row_tile(R, lane_tile, dtype, tile_bytes):
    sub = _sublane_align(dtype)
    if R <= sub:
        return R  # full extent
    itemsize = jnp.dtype(dtype).itemsize
    budget = max(tile_bytes // max(lane_tile * itemsize, 1), sub)
    cc = min(R, budget)
    return max((cc // sub) * sub, sub)


def _affine_single_block(x2, w2, b2, *, cost, donate):
    # Whole arrays fit comfortably in VMEM: one block, no grid.
    return pl.pallas_call(
        _affine_kernel,
        out_shape=jax.ShapeDtypeStruct(x2.shape, x2.dtype),
        cost_estimate=cost,
        input_output_aliases={0: 0} if donate else {},
    )(x2, w2, b2)


def _affine_2d(x2, w2, b2, *, cc, cs, vmem_limit, cost, donate):
    R, L = x2.shape
    grid = (pl.cdiv(R, cc), pl.cdiv(L, cs))
    if w2.shape[0] == 1:
        # Per-lane parameters (1, L): block follows the lane axis.
        w_block, w_map = (1, cs), (lambda i, j: (0, j))
    else:
        # Per-row parameters (R, 1): block follows the (outer) row axis only,
        # so weight/bias are not re-DMA'd per lane step.
        w_block, w_map = (cc, 1), (lambda i, j: (i, 0))
    return pl.pallas_call(
        _affine_kernel,
        out_shape=jax.ShapeDtypeStruct((R, L), x2.dtype),
        grid_spec=pltpu.PrefetchScalarGridSpec(
            num_scalar_prefetch=0,
            grid=grid,
            in_specs=[
                pl.BlockSpec((cc, cs), lambda i, j: (i, j)),
                pl.BlockSpec(w_block, w_map),
                pl.BlockSpec(w_block, w_map),
            ],
            out_specs=pl.BlockSpec((cc, cs), lambda i, j: (i, j)),
        ),
        compiler_params=pltpu.CompilerParams(
            dimension_semantics=("parallel", "parallel"),
            vmem_limit_bytes=vmem_limit,
        ),
        cost_estimate=cost,
        input_output_aliases={0: 0} if donate else {},
    )(x2, w2, b2)


def affine_forward(x, weight, bias, *, tile_bytes=None,
                   fast_path_bytes=8 << 20, donate_input=False):
    """y = x * weight + bias with weight/bias of shape (C,1,1,1), x NCDHW."""
    N, C, D, H, W = x.shape
    S = D * H * W
    itemsize = jnp.dtype(x.dtype).itemsize

    # Parameters stay float32 (PyTorch numerics); bandwidth-free because the
    # kernel computes in f32 and casts on the store.
    w_c = weight.reshape(C).astype(jnp.float32)
    b_c = bias.reshape(C).astype(jnp.float32)

    cost = pl.CostEstimate(
        flops=2 * N * C * S,
        transcendentals=0,
        bytes_accessed=2 * N * C * S * itemsize + 2 * C * 4,
    )

    if S >= _LANE:
        # (N*C, S): row tiles may cross batch boundaries; per-row parameters.
        R, L = N * C, S
        x2 = x.reshape(R, L)
        w2 = jnp.broadcast_to(w_c, (N, C)).reshape(R, 1)
        b2 = jnp.broadcast_to(b_c, (N, C)).reshape(R, 1)
    else:
        # Tiny spatial extent: put C*S on lanes to keep stores lane-dense;
        # per-lane parameter rows (still tiny: C*S*4 bytes).
        R, L = N, C * S
        x2 = x.reshape(R, L)
        w2 = jnp.repeat(w_c, S).reshape(1, L)
        b2 = jnp.repeat(b_c, S).reshape(1, L)

    total_bytes = 2 * R * L * itemsize  # x + out
    if total_bytes <= fast_path_bytes:
        y2 = _affine_single_block(x2, w2, b2, cost=cost, donate=donate_input)
        return y2.reshape(N, C, D, H, W)

    vmem_cap = _vmem_capacity_bytes()
    vmem_limit = min(vmem_cap * 3 // 4, 64 << 20)  # ~48 MiB v7x, 64 MiB v5e/v6e
    if tile_bytes is None:
        # Bigger tiles on the 128 MiB-VMEM parts; 4 MiB on v7x (64 MiB VMEM).
        tile_bytes = (8 << 20) if vmem_cap >= (100 << 20) else (4 << 20)

    cs = _choose_lane_tile(L)
    cc = _choose_row_tile(R, cs, x.dtype, tile_bytes)

    # Double-buffered x + out tiles (plus slack) must fit the scoped limit.
    resident = 4 * cc * cs * itemsize + (1 << 20)
    assert resident <= vmem_limit, (resident, vmem_limit)

    y2 = _affine_2d(x2, w2, b2, cc=cc, cs=cs, vmem_limit=vmem_limit,
                    cost=cost, donate=donate_input)
    return y2.reshape(N, C, D, H, W)


if __name__ == "__main__":
    key = jax.random.PRNGKey(0)
    k_x, k_w, k_b = jax.random.split(key, 3)

    def _check(shape, dtype=jnp.float32, **kwargs):
        N, C, D, H, W = shape
        x = jax.random.normal(k_x, shape, dtype=dtype)
        weight = jax.random.normal(k_w, (C, 1, 1, 1), dtype=jnp.float32)
        bias = jax.random.normal(k_b, (C, 1, 1, 1), dtype=jnp.float32)

        y = jax.block_until_ready(affine_forward(x, weight, bias, **kwargs))

        y_ref = (x.astype(jnp.float32) * weight.reshape(1, C, 1, 1, 1)
                 + bias.reshape(1, C, 1, 1, 1)).astype(dtype)
        assert y.shape == x.shape and y.dtype == x.dtype
        assert jnp.allclose(y, y_ref, atol=1e-5, rtol=1e-5), "mismatch vs reference"

    # 1) tiny NCDHW tensor -> single-block fast path
    _check((2, 4, 4, 8, 8))
    # 2) same tensor forced through the tiled (N*C, S) path
    _check((2, 4, 4, 8, 8), fast_path_bytes=0)
    # 3) S < 128 -> (N, C*S) lane layout, forced through the tiled path
    _check((2, 4, 2, 4, 4), fast_path_bytes=0)

    print("KERNEL_OK")
</pallas_src>

<mosaic_0001>
module attributes {stable_mosaic.version = 11 : i64} {
  func.func @_affine_kernel(%arg0: memref<8x256xf32, #tpu.memory_space<vmem>>, %arg1: memref<8x1xf32, #tpu.memory_space<vmem>>, %arg2: memref<8x1xf32, #tpu.memory_space<vmem>>, %arg3: memref<8x256xf32, #tpu.memory_space<vmem>>) attributes {dimension_semantics = [], scalar_prefetch = 0 : i64, scratch_operands = 0 : i64, tpu.core_type = #tpu.core_type<tc>} {
    %c0 = arith.constant 0 : index
    %c0_0 = arith.constant 0 : index
    %0 = vector.load %arg0[%c0, %c0_0] : memref<8x256xf32, #tpu.memory_space<vmem>>, vector<8x256xf32>
    %c0_1 = arith.constant 0 : index
    %c0_2 = arith.constant 0 : index
    %1 = vector.load %arg1[%c0_1, %c0_2] : memref<8x1xf32, #tpu.memory_space<vmem>>, vector<8x1xf32>
    %2 = vector.broadcast %1 : vector<8x1xf32> to vector<8x256xf32>
    %3 = arith.mulf %0, %2 : vector<8x256xf32>
    %c0_3 = arith.constant 0 : index
    %c0_4 = arith.constant 0 : index
    %4 = vector.load %arg2[%c0_3, %c0_4] : memref<8x1xf32, #tpu.memory_space<vmem>>, vector<8x1xf32>
    %5 = vector.broadcast %4 : vector<8x1xf32> to vector<8x256xf32>
    %6 = arith.addf %3, %5 : vector<8x256xf32>
    %c0_5 = arith.constant 0 : index
    %c0_6 = arith.constant 0 : index
    %7 = vector.load %arg3[%c0_5, %c0_6] : memref<8x256xf32, #tpu.memory_space<vmem>>, vector<8x256xf32>
    tpu.vector_store %arg3[%c0_5, %c0_6], %6 {strides = array<i32>} : memref<8x256xf32, #tpu.memory_space<vmem>>, vector<8x256xf32>,
    return
  }
}

</mosaic_0001>

<bundles_post_ra>
// kernel: tpu_custom_call.1
= control target key start
LH: loop header
LB: loop body
LE: loop exit
PB: predicated region body
PF: predicated region fallthrough
CT: control target
= control target key end

     0   :  { %s122_s0 = inlined_call_operand.vmem [shape: f32[8,256], index: 0, kind: input, shape index: {}]   ;;  %s123_s1 = inlined_call_operand.vmem [shape: f32[8,1], index: 1, kind: input, shape index: {}]   ;;  %s124_s2 = inlined_call_operand.vmem [shape: f32[8,1], index: 2, kind: input, shape index: {}]   ;;  %s125_s3 = inlined_call_operand.hbm [shape: f32[8,256], index: 3, kind: output, shape index: {}]  }
   0x1   :  { %v17_v0 = vld [vmem:[%s123_s1] sm:$0xff] }
   0x2   :  { %8 = vsyncpa [#allocation3], 0  ;;  %v76_v1 = vmov 0   ;;  %v25_v2 = vld [vmem:[%s124_s2] sm:$0xff]  ;;  %v16_v5 = vld [vmem:[%s122_s0 + $0x8] sm:$0xff]  ;;  %s77_s20 = smov [#allocation2]  }
   0x3   :  { %51 = vset.pattern.permute.xlu0 %v76_v1  ;;  %v15_v4 = vld [vmem:[%s122_s0] sm:$0xff]  ;;  %s41_s1 = sshll.u32 %s77_s20, 4  ;;  %s42_s1 = int_to_ptr.vmem [resolvable:$true] %s41_s1 }
   0x4   :  { %20 = vperm.xlu0 %51, %v17_v0   ;;  %s52_s2 = scalar_lea.vmem %s42_s1, 256  ;;  %p57_p1 = scmp.lt.s32.totalorder %s42_s1, %s42_s1 }
   0x5   :  { %p53_p0 = scmp.ne.s32.totalorder %s42_s1, %s52_s2  ;;  %p58_p2 = scmp.lt.s32.totalorder %s52_s2, %s52_s2 }
   0x7   :  { %p59_p3 = por %p58_p2, %p57_p1 }
   0x8   :  { %28 = vperm.xlu0 %51, %v25_v2  }
   0x9   :  { %p60_p4 = pnand %p59_p3, %p53_p0 }
  0x83   :  { %v21_v3 = vpop.permute.xlu0 %20 }
  0x84   :  { %v23_v6 = vmul.f32 %v21_v3, %v15_v4  ;;  %v24_v7 = vmul.f32 %v21_v3, %v16_v5 }
  0x87   :  { %v29_v8 = vpop.permute.xlu0 %28 }
  0x88   :  { %v31_v9 = vadd.f32 %v29_v8, %v23_v6  ;;  %v32_v10 = vadd.f32 %v29_v8, %v24_v7 }
  0x8a   :  { %33 = vst [vmem:[#allocation2] sm:$0xff] %v31_v9  ;;  %34 = vst [vmem:[#allocation2 + $0x8] sm:$0xff] %v32_v10 }
  0x8b   :  { %63 = shalt.err (!%p60_p4)
}
  0x8c   :  { %s64_s0 = scalar_lea.hbm %s125_s3, 256 }
  0x8d   :  { %p65_p5 = scmp.ne.s32.totalorder %s125_s3, %s64_s0  ;;  %p68_p6 = scmp.lt.u32.totalorder %s64_s0, %s125_s3 }
  0x8f   :  { %p70_p7 = pnand %p68_p6, %p65_p5 }
  0x91   :  { %73 = shalt.err (!%p70_p7)
}
  0x92   :  { %44 = dma.vmem_to_hbm [thread:$0]  %s42_s1, 256, %s125_s3, [#allocation3]  }
  0x93   :  { %74 = dma.done.wait [#allocation3], 256  }
  0x94   :  { %75 = vsyncadd [#allocation3], 4294967040 }
  0x95   :  { %48 = vsyncpa [#allocation3], 1 }

</bundles_post_ra>
